<compile_context>
chip_gen: v7x
topology: tpu7x:2x2x1
jax: 0.10.0
libtpu: 0.0.40
codegen_flags: <defaults>
</compile_context>

<pallas_src>
import functools

import jax
import jax.numpy as jnp
from jax.experimental import pallas as pl
from jax.experimental.pallas import tpu as pltpu

_VMEM_LIMIT_BYTES = 48 * 1024 * 1024   # safe on v5e/v6e (128 MiB) and v7x (64 MiB)
_FULLK_BYTES_CAP = 8192                # full-K fold if Kp*itemsize <= this (2048 f32 / 4096 bf16)
_KGRID_TK_BYTES = 4096                 # K-grid tk target: 1024 f32 / 2048 bf16


# ----------------------------- kernels -----------------------------

def _gemm_acc_bias_kernel(x_ref, w_ref, b_ref, o_ref, acc_ref):
    """K-grid path: x (tm,tk) @ w (tk,tn) with f32 VMEM accumulator, bias in epilogue."""
    k = pl.program_id(2)

    @pl.when(k == 0)
    def _():
        acc_ref[...] = jnp.zeros_like(acc_ref)

    acc_ref[...] += jnp.dot(x_ref[...], w_ref[...], preferred_element_type=jnp.float32)

    @pl.when(k == pl.num_programs(2) - 1)
    def _():
        o_ref[...] = (acc_ref[...] + b_ref[...].astype(jnp.float32)).astype(o_ref.dtype)


def _gemm_acc_nobias_kernel(x_ref, w_ref, o_ref, acc_ref):
    k = pl.program_id(2)

    @pl.when(k == 0)
    def _():
        acc_ref[...] = jnp.zeros_like(acc_ref)

    acc_ref[...] += jnp.dot(x_ref[...], w_ref[...], preferred_element_type=jnp.float32)

    @pl.when(k == pl.num_programs(2) - 1)
    def _():
        o_ref[...] = acc_ref[...].astype(o_ref.dtype)


def _gemm_fullk_bias_kernel(x_ref, w_ref, b_ref, o_ref):
    """Full-K fold: one MXU pass per output tile, no accumulator scratch / pl.when."""
    acc = jnp.dot(x_ref[...], w_ref[...], preferred_element_type=jnp.float32)
    o_ref[...] = (acc + b_ref[...].astype(jnp.float32)).astype(o_ref.dtype)


def _gemm_fullk_nobias_kernel(x_ref, w_ref, o_ref):
    acc = jnp.dot(x_ref[...], w_ref[...], preferred_element_type=jnp.float32)
    o_ref[...] = acc.astype(o_ref.dtype)


# ----------------------------- helpers -----------------------------

def _round_up(a: int, b: int) -> int:
    return (a + b - 1) // b * b


def _cdiv(a: int, b: int) -> int:
    return (a + b - 1) // b


def _pick_divisor_tile(padded: int, unit: int, cap: int) -> int:
    """Largest multiple of `unit` <= cap that divides `padded` (padded % unit == 0)."""
    t = min(cap, padded)
    t -= t % unit
    t = max(t, unit)
    while padded % t:
        t -= unit
    return t


def _weight_spec(block_shape, index_map, deepen: bool):
    """Weight BlockSpec; 3-deep pipeline in the decode regime when supported."""
    if deepen:
        try:
            return pl.BlockSpec(block_shape, index_map, pipeline_mode=pl.Buffered(3))
        except (TypeError, AttributeError):
            pass
    return pl.BlockSpec(block_shape, index_map)


# --------------------------- jitted forward ---------------------------

@functools.partial(
    jax.jit,
    static_argnames=("tm", "tn", "tk", "has_bias", "compute_dtype", "n_out"),
)
def _forward_impl(x, w_kn, bias2d, *, tm, tn, tk, has_bias, compute_dtype, n_out):
    """y[:M, :n_out] = x @ w_kn (+ bias).  w_kn is pre-transposed/padded (Kp, Np)."""
    M, K = x.shape
    Kp, Np = w_kn.shape
    out_dtype = x.dtype

    xp = x
    if compute_dtype is not None and xp.dtype != compute_dtype:
        xp = xp.astype(compute_dtype)
    Mp = _round_up(M, tm)
    if Mp != M or Kp != K:
        xp = jnp.pad(xp, ((0, Mp - M), (0, Kp - K)))

    grid_m, grid_n, grid_k = Mp // tm, Np // tn, Kp // tk
    deepen = (grid_k > 1) and (grid_m == 1) and (grid_m * grid_n * grid_k >= 3)

    flops = 2 * Mp * Np * Kp
    bytes_accessed = (
        Mp * Kp * xp.dtype.itemsize
        + Kp * Np * w_kn.dtype.itemsize
        + Mp * Np * jnp.dtype(out_dtype).itemsize
        + (Np * bias2d.dtype.itemsize if has_bias else 0)
    )
    cost = pl.CostEstimate(flops=flops, bytes_accessed=bytes_accessed, transcendentals=0)

    if grid_k == 1:
        # Full-K fold: no reduction axis, no accumulator scratch.
        grid = (grid_m, grid_n)
        in_specs = [
            pl.BlockSpec((tm, tk), lambda i, j: (i, 0)),          # x
            _weight_spec((tk, tn), lambda i, j: (0, j), deepen),  # weight (K, N)
        ]
        if has_bias:
            in_specs.append(pl.BlockSpec((1, tn), lambda i, j: (0, j)))
        out_spec = pl.BlockSpec((tm, tn), lambda i, j: (i, j))
        scratch = []
        kernel = _gemm_fullk_bias_kernel if has_bias else _gemm_fullk_nobias_kernel
        semantics = ("parallel", "parallel")
    else:
        # K-grid path with persistent f32 VMEM accumulator (reduction axis last).
        grid = (grid_m, grid_n, grid_k)
        in_specs = [
            pl.BlockSpec((tm, tk), lambda i, j, k: (i, k)),           # x
            _weight_spec((tk, tn), lambda i, j, k: (k, j), deepen),   # weight (K, N)
        ]
        if has_bias:
            in_specs.append(pl.BlockSpec((1, tn), lambda i, j, k: (0, j)))
        out_spec = pl.BlockSpec((tm, tn), lambda i, j, k: (i, j))
        scratch = [pltpu.VMEM((tm, tn), jnp.float32)]
        kernel = _gemm_acc_bias_kernel if has_bias else _gemm_acc_nobias_kernel
        semantics = ("parallel", "parallel", "arbitrary")

    args = (xp, w_kn, bias2d) if has_bias else (xp, w_kn)
    out = pl.pallas_call(
        kernel,
        out_shape=jax.ShapeDtypeStruct((Mp, Np), out_dtype),
        grid=grid,
        in_specs=in_specs,
        out_specs=out_spec,
        scratch_shapes=scratch,
        compiler_params=pltpu.CompilerParams(
            dimension_semantics=semantics,
            vmem_limit_bytes=_VMEM_LIMIT_BYTES,
        ),
        cost_estimate=cost,
    )(*args)
    return out[:M, :n_out]


# ----------------------------- module -----------------------------

class RowParallelLinear:
    """Single-device (tp_size=1, tp_rank=0) RowParallelLinear forward with a Pallas GEMM.

    weight: (output_size, input_size_per_partition) in PyTorch layout.
    bias:   (output_size,) or None (the module's default is bias=False).
    compute_dtype: optional MXU operand dtype (e.g. jnp.bfloat16); accumulation stays f32.
    """

    def __init__(self, weight, bias=None, *, compute_dtype=None, tm_cap=512, tn_cap=512):
        weight = jnp.asarray(weight)
        N, K = weight.shape
        self.output_size = N
        self.input_size_per_partition = K
        self.compute_dtype = compute_dtype
        self.has_bias = bias is not None

        in_dtype = jnp.dtype(compute_dtype) if compute_dtype is not None else weight.dtype
        itemsize = jnp.dtype(in_dtype).itemsize
        self._sublane = 16 if itemsize < 4 else 8            # bf16 sublane packing
        self.tm_cap = max(self._sublane, (min(tm_cap, 512) // self._sublane) * self._sublane)

        # Lane-dense N tile that divides the (once-)padded N -> no extra weight re-streaming.
        Np = _round_up(N, 128)
        self.tn = _pick_divisor_tile(Np, 128, min(tn_cap, 512))

        # Full-K fold when the per-partition K fits the VMEM budget; otherwise K grid.
        Kp128 = _round_up(K, 128)
        if Kp128 * itemsize <= _FULLK_BYTES_CAP:
            Kp = Kp128
            self.tk = Kp
        else:
            Kp = Kp128
            self.tk = _pick_divisor_tile(Kp, 128, max(128, _KGRID_TK_BYTES // itemsize))

        # Pre-transpose to (K, N), pad, cast -- exactly once (model-load time), never per call.
        w = weight
        if compute_dtype is not None:
            w = w.astype(compute_dtype)
        w = w.T
        if (Kp, Np) != (K, N):
            w = jnp.pad(w, ((0, Kp - K), (0, Np - N)))
        self.w_kn = jax.device_put(w)

        if self.has_bias:
            b = jnp.asarray(bias)
            if Np != N:
                b = jnp.pad(b, (0, Np - N))
            self.bias2d = jax.device_put(b.reshape(1, Np))
        else:
            self.bias2d = None

    def __call__(self, x):
        orig_shape = x.shape
        K = orig_shape[-1]
        assert K == self.input_size_per_partition, "input_size mismatch"
        x2 = x.reshape(-1, K)
        M = x2.shape[0]

        tm = min(_round_up(M, self._sublane), self.tm_cap)

        # Megacore (v7x): if M fits one tile, keep >= 2 blocks in the parallel M x N grid.
        tn = self.tn
        Np = self.w_kn.shape[1]
        if _cdiv(M, tm) == 1 and Np // tn == 1 and Np % 256 == 0:
            tn = Np // 2

        y = _forward_impl(
            x2, self.w_kn, self.bias2d,
            tm=tm, tn=tn, tk=self.tk,
            has_bias=self.has_bias,
            compute_dtype=self.compute_dtype,
            n_out=self.output_size,
        )
        return y.reshape(*orig_shape[:-1], self.output_size)


# ----------------------------- tests -----------------------------

if __name__ == "__main__":
    key = jax.random.PRNGKey(0)
    kx, kw, kb, k2x, k2w, k2b, k3x, k3w = jax.random.split(key, 8)

    # Small shapes consistent with the module: seq=8 tokens, input_size=32, output_size=64.
    input_size, output_size, num_tokens = 32, 64, 8
    x = jax.random.normal(kx, (num_tokens, input_size), dtype=jnp.float32)
    w = jax.random.normal(kw, (output_size, input_size), dtype=jnp.float32) * 0.02
    b = jax.random.normal(kb, (output_size,), dtype=jnp.float32) * 0.01

    # With bias (tp_rank == 0 path).  Full-K fold, bias kernel.
    y = jax.block_until_ready(RowParallelLinear(w, b)(x))
    y_ref = x @ w.T + b
    assert y.shape == (num_tokens, output_size)
    assert jnp.allclose(y, y_ref, atol=1e-4, rtol=1e-4), "mismatch vs reference (small, bias)"

    # Without bias (RowParallelLinear default bias=False).  Full-K fold, no-bias kernel.
    y_nb = jax.block_until_ready(RowParallelLinear(w, None)(x))
    assert jnp.allclose(y_nb, x @ w.T, atol=1e-4, rtol=1e-4), "mismatch vs reference (small, no bias)"

    # Multi-tile K-reduction path: K grid + f32 accumulator + deepened weight stream.
    M2, K2, N2 = 96, 4096, 256
    x2 = jax.random.normal(k2x, (M2, K2), dtype=jnp.float32)
    w2 = jax.random.normal(k2w, (N2, K2), dtype=jnp.float32) * 0.02
    b2 = jax.random.normal(k2b, (N2,), dtype=jnp.float32) * 0.01
    y2 = jax.block_until_ready(RowParallelLinear(w2, b2)(x2))
    assert jnp.allclose(y2, x2 @ w2.T + b2, atol=2e-2, rtol=2e-2), "mismatch vs reference (K-grid)"

    # bf16 operands / f32 accumulation (MXU-peak + halved weight bytes), full-K fold.
    M3, K3, N3 = 64, 1024, 512
    x3 = jax.random.normal(k3x, (M3, K3), dtype=jnp.float32)
    w3 = jax.random.normal(k3w, (N3, K3), dtype=jnp.float32) * 0.02
    y3 = jax.block_until_ready(RowParallelLinear(w3, None, compute_dtype=jnp.bfloat16)(x3))
    assert jnp.allclose(y3, x3 @ w3.T, atol=5e-2, rtol=5e-2), "mismatch vs reference (bf16)"

    print("KERNEL_OK")
</pallas_src>

<mosaic_0001>
module attributes {stable_mosaic.version = 11 : i64} {
  func.func @_gemm_fullk_bias_kernel(%arg0: i32, %arg1: i32, %arg2: memref<8x128xf32, #tpu.memory_space<vmem>>, %arg3: memref<128x128xf32, #tpu.memory_space<vmem>>, %arg4: memref<1x128xf32, #tpu.memory_space<vmem>>, %arg5: memref<8x128xf32, #tpu.memory_space<vmem>>) attributes {dimension_semantics = [#tpu.dimension_semantics<parallel>, #tpu.dimension_semantics<parallel>], iteration_bounds = array<i64: 1, 1>, scalar_prefetch = 0 : i64, scratch_operands = 0 : i64, tpu.core_type = #tpu.core_type<tc>, window_params = [{transform_indices = @transform_0, window_bounds = array<i64: 8, 128>}, {transform_indices = @transform_1, window_bounds = array<i64: 128, 128>}, {transform_indices = @transform_2, window_bounds = array<i64: 1, 128>}, {transform_indices = @transform_3, window_bounds = array<i64: 8, 128>}]} {
    %c0 = arith.constant 0 : index
    %c0_0 = arith.constant 0 : index
    %0 = vector.load %arg2[%c0, %c0_0] : memref<8x128xf32, #tpu.memory_space<vmem>>, vector<8x128xf32>
    %c0_1 = arith.constant 0 : index
    %c0_2 = arith.constant 0 : index
    %1 = vector.load %arg3[%c0_1, %c0_2] : memref<128x128xf32, #tpu.memory_space<vmem>>, vector<128x128xf32>
    %cst = arith.constant dense<0.000000e+00> : vector<8x128xf32>
    %2 = tpu.matmul %0, %1, %cst {dimension_numbers = #tpu.dot_dimension_numbers<[1], [0], [0], [1], [0, 0, 1, 1], [], []>} : vector<8x128xf32>, vector<128x128xf32>, vector<8x128xf32> -> vector<8x128xf32>
    %c0_3 = arith.constant 0 : index
    %c0_4 = arith.constant 0 : index
    %3 = vector.load %arg4[%c0_3, %c0_4] : memref<1x128xf32, #tpu.memory_space<vmem>>, vector<1x128xf32>
    %4 = vector.broadcast %3 : vector<1x128xf32> to vector<8x128xf32>
    %5 = arith.addf %2, %4 : vector<8x128xf32>
    %c0_5 = arith.constant 0 : index
    %c0_6 = arith.constant 0 : index
    %6 = vector.load %arg5[%c0_5, %c0_6] : memref<8x128xf32, #tpu.memory_space<vmem>>, vector<8x128xf32>
    tpu.vector_store %arg5[%c0_5, %c0_6], %5 {strides = array<i32>} : memref<8x128xf32, #tpu.memory_space<vmem>>, vector<8x128xf32>,
    return
  }
  func.func @transform_0(%arg0: i32, %arg1: i32) -> (i32, i32) {
    %c0_i32 = arith.constant 0 : i32
    %c0_i32_0 = arith.constant 0 : i32
    return %arg0, %c0_i32 : i32, i32
  }
  func.func @transform_1(%arg0: i32, %arg1: i32) -> (i32, i32) {
    %c0_i32 = arith.constant 0 : i32
    %c0_i32_0 = arith.constant 0 : i32
    return %c0_i32, %arg1 : i32, i32
  }
  func.func @transform_2(%arg0: i32, %arg1: i32) -> (i32, i32) {
    %c0_i32 = arith.constant 0 : i32
    %c0_i32_0 = arith.constant 0 : i32
    return %c0_i32, %arg1 : i32, i32
  }
  func.func @transform_3(%arg0: i32, %arg1: i32) -> (i32, i32) {
    %c0_i32 = arith.constant 0 : i32
    return %arg0, %arg1 : i32, i32
  }
}

</mosaic_0001>

<bundles_post_ra>
// kernel: _forward_impl.1
= control target key start
LH: loop header
LB: loop body
LE: loop exit
PB: predicated region body
PF: predicated region fallthrough
CT: control target
= control target key end

     0   :  { %8 = vsyncpa [#allocation3], 0  ;;  %s328_s0 = inlined_call_operand.vmem [shape: f32[8,128], index: 0, kind: input, shape index: {}]   ;;  %s329_s1 = inlined_call_operand.hbm [shape: f32[128,128], index: 1, kind: input, shape index: {}]   ;;  %s330_s2 = inlined_call_operand.vmem [shape: f32[1,128], index: 2, kind: input, shape index: {}]   ;;  %s331_s3 = inlined_call_operand.hbm [shape: f32[8,128], index: 3, kind: output, shape index: {}]  }
   0x1   :  { %9 = vsyncpa [#allocation4], 0  ;;  %s271_s12 = smov [#allocation2]   ;;  %s223_s16 = scalar_lea.hbm %s329_s1, 2048 }
   0x2   :  { %s17_s13 = sshll.u32 %s271_s12, 4  ;;  %p224_p0 = scmp.ne.s32.totalorder %s329_s1, %s223_s16  ;;  %s18_s13 = int_to_ptr.vmem [resolvable:$true] %s17_s13 }
   0x3   :  { %p227_p1 = scmp.lt.u32.totalorder %s223_s16, %s329_s1 }
   0x5   :  { %p229_p2 = pnand %p227_p1, %p224_p0 }
   0x7   :  { %232 = shalt.err (!%p229_p2)
}
   0x8   :  { %s233_s21 = scalar_lea.vmem %s18_s13, 2048  ;;  %p238_p4 = scmp.lt.s32.totalorder %s18_s13, %s18_s13 }
   0x9   :  { %p234_p3 = scmp.ne.s32.totalorder %s18_s13, %s233_s21  ;;  %p239_p5 = scmp.lt.s32.totalorder %s233_s21, %s233_s21 }
   0xb   :  { %p240_p6 = por %p239_p5, %p238_p4 }
   0xd   :  { %p241_p7 = pnand %p240_p6, %p234_p3 }
   0xf   :  { %244 = shalt.err (!%p241_p7)
}
  0x10   :  { %s272_s22 = smov 128   ;;  %s273_s23 = smov 8  }
  0x11   :  { %23 = dma.hbm_to_vmem [thread:$0]  %s329_s1, 2048, %s18_s13, [#allocation3], %s272_s22, %s272_s22, %s273_s23  }
  0x12   :  { %267 = dma.done.wait [#allocation3], 2048  }
  0x13   :  { %268 = vsyncadd [#allocation3], 4294965248  ;;  %v274_v0 = vmov 0.0|0.0   ;;  %vm275_vm0 = vmmov 0   ;;  %v276_v1 = vmov 0.0   ;;  %v30_v2 = vld [vmem:[#allocation2] sm:$0xff] }
  0x14   :  { %192 = vmatprep.subr.bf16.mxu0 %v274_v0  ;;  %189 = vmatprep.mubr.msk.f32.mxu0 %vm275_vm0, %v276_v1  ;;  %v31_v3 = vld [vmem:[#allocation2 + $0x8] sm:$0xff]  ;;  %v32_v4 = vld [vmem:[#allocation2 + $0x10] sm:$0xff]  ;;  %v33_v6 = vld [vmem:[#allocation2 + $0x18] sm:$0xff]  ;;  %s277_s29 = smov [#allocation5]  }
  0x15   :  { %v193_v5 = vpack.c.bf16 %v31_v3, %v30_v2  ;;  %v196_v7 = vpack.c.bf16 %v33_v6, %v32_v4  ;;  %v34_v8 = vld [vmem:[#allocation2 + $0x20] sm:$0xff]  ;;  %v35_v9 = vld [vmem:[#allocation2 + $0x28] sm:$0xff]  ;;  %v36_v11 = vld [vmem:[#allocation2 + $0x30] sm:$0xff]  ;;  %s130_s30 = sshll.u32 %s277_s29, 4  ;;  %s131_s30 = int_to_ptr.vmem [resolvable:$true] %s130_s30 }
  0x16   :  { %v199_v10 = vpack.c.bf16 %v35_v9, %v34_v8  ;;  %v37_v12 = vld [vmem:[#allocation2 + $0x38] sm:$0xff]  ;;  %v38_v14 = vld [vmem:[#allocation2 + $0x40] sm:$0xff]  ;;  %v39_v15 = vld [vmem:[#allocation2 + $0x48] sm:$0xff]  ;;  %s245_s4 = scalar_lea.vmem %s131_s30, 128  ;;  %p250_p9 = scmp.lt.s32.totalorder %s131_s30, %s131_s30 }
  0x17   :  { %194 = vmatpush3.bf16.msra.mxu0 %v193_v5  ;;  %v202_v13 = vpack.c.bf16 %v37_v12, %v36_v11  ;;  %v205_v16 = vpack.c.bf16 %v39_v15, %v38_v14  ;;  %v40_v17 = vld [vmem:[#allocation2 + $0x50] sm:$0xff]  ;;  %v41_v18 = vld [vmem:[#allocation2 + $0x58] sm:$0xff]  ;;  %v42_v20 = vld [vmem:[#allocation2 + $0x60] sm:$0xff]  ;;  %p246_p8 = scmp.ne.s32.totalorder %s131_s30, %s245_s4  ;;  %p251_p10 = scmp.lt.s32.totalorder %s245_s4, %s245_s4 }
  0x18   :  { %195 = vmatprep.subr.bf16.mxu0 %v274_v0  ;;  %v208_v19 = vpack.c.bf16 %v41_v18, %v40_v17  ;;  %v43_v21 = vld [vmem:[#allocation2 + $0x68] sm:$0xff]  ;;  %v44_v23 = vld [vmem:[#allocation2 + $0x70] sm:$0xff]  ;;  %v45_v24 = vld [vmem:[#allocation2 + $0x78] sm:$0xff] }
  0x19   :  { %v211_v22 = vpack.c.bf16 %v43_v21, %v42_v20  ;;  %v214_v25 = vpack.c.bf16 %v45_v24, %v44_v23  ;;  %v29_v26 = vld [vmem:[%s328_s0] sm:$0xff]  ;;  %p252_p11 = por %p251_p10, %p250_p9 }
  0x1a   :  { %v139_v27 = vld [vmem:[%s330_s2] ss:$0 sm:$0xff] }
  0x1b   :  { %197 = vmatpush3.bf16.msra.mxu0 %v196_v7  ;;  %p253_p12 = pnand %p252_p11, %p246_p8 }
  0x1c   :  { %198 = vmatprep.subr.bf16.mxu0 %v274_v0 }
  0x1f   :  { %200 = vmatpush3.bf16.msra.mxu0 %v199_v10 }
  0x20   :  { %201 = vmatprep.subr.bf16.mxu0 %v274_v0 }
  0x23   :  { %203 = vmatpush3.bf16.msra.mxu0 %v202_v13 }
  0x24   :  { %204 = vmatprep.subr.bf16.mxu0 %v274_v0 }
  0x27   :  { %206 = vmatpush3.bf16.msra.mxu0 %v205_v16 }
  0x28   :  { %207 = vmatprep.subr.bf16.mxu0 %v274_v0 }
  0x2b   :  { %209 = vmatpush3.bf16.msra.mxu0 %v208_v19 }
  0x2c   :  { %210 = vmatprep.subr.bf16.mxu0 %v274_v0 }
  0x2f   :  { %212 = vmatpush3.bf16.msra.mxu0 %v211_v22 }
  0x30   :  { %213 = vmatprep.subr.bf16.mxu0 %v274_v0 }
  0x33   :  { %215 = vmatpush3.bf16.msra.mxu0 %v214_v25 }
  0x36   :  { %190 = vmatmul.mubr.f32.vlgmr.msra.gmra.mrb[0].mxu0 %v29_v26 }
 0x109   :  { %v119_v28 = vpop.f32.mrb[0].mxu0 }
 0x10a   :  { %v120_v29 = vadd.f32 %v139_v27, %v119_v28  ;;  %v191_v30 = vpop.f32.mrb[1].mxu0 }
 0x10c   :  { %123 = vst [vmem:[#allocation5] sm:$0xff] %v120_v29 }
 0x10d   :  { %256 = shalt.err (!%p253_p12)
}
 0x10e   :  { %s257_s6 = scalar_lea.hbm %s331_s3, 128 }
 0x10f   :  { %p258_p13 = scmp.ne.s32.totalorder %s331_s3, %s257_s6  ;;  %p261_p0 = scmp.lt.u32.totalorder %s257_s6, %s331_s3 }
 0x111   :  { %p263_p1 = pnand %p261_p0, %p258_p13 }
 0x113   :  { %266 = shalt.err (!%p263_p1)
}
 0x114   :  { %133 = dma.vmem_to_hbm [thread:$0]  %s131_s30, 128, %s331_s3, [#allocation4]  }
 0x115   :  { %269 = dma.done.wait [#allocation4], 128  }
 0x116   :  { %270 = vsyncadd [#allocation4], 4294967168 }
 0x117   :  { %137 = vsyncpa [#allocation3], 1 }
 0x118   :  { %138 = vsyncpa [#allocation4], 1 }

</bundles_post_ra>
